<compile_context>
chip_gen: v7x
topology: tpu7x:2x2x1
jax: 0.10.0
libtpu: 0.0.40
codegen_flags: <defaults>
</compile_context>

<pallas_src>
import functools

import jax
import jax.numpy as jnp
from jax.experimental import pallas as pl
from jax.experimental.pallas import tpu as pltpu


def _round_up(x, m):
    return (x + m - 1) // m * m


# ----------------------------------------------------------------------------
# Kernels
# ----------------------------------------------------------------------------
def gcn_conv_kernel(a_ref, x_ref, w1_ref, b1_ref, h_ref, acc_ref, *,
                    tile, src_resident):
    """h[i] = relu( (sum_k A_gcn[i,k] @ X[k]) @ W1 + b1 )  (reordered contraction)."""
    k = pl.program_id(1)

    @pl.when(k == 0)
    def _():
        acc_ref[...] = jnp.zeros_like(acc_ref)

    if src_resident:
        start = pl.multiple_of(k * tile, tile)
        x_blk = x_ref[pl.ds(start, tile), :]
    else:
        x_blk = x_ref[...]
    acc_ref[...] += jnp.dot(a_ref[...], x_blk, preferred_element_type=jnp.float32)

    @pl.when(k == pl.num_programs(1) - 1)
    def _():
        h = jnp.dot(acc_ref[...].astype(jnp.bfloat16), w1_ref[...],
                    preferred_element_type=jnp.float32) + b1_ref[...]
        h_ref[...] = jnp.maximum(h, 0.0).astype(h_ref.dtype)


def gated_layer_kernel(a_ref, hw_ref, hi_ref, wi_ref, wh_ref, bi_ref, bh_ref,
                       out_ref, acc_ref, *, tile, hp, apply_relu, src_resident):
    """One GatedGraphConv layer: m = A_msg @ HW (HW precomputed); h' = GRUCell(m, h)."""
    k = pl.program_id(1)

    @pl.when(k == 0)
    def _():
        acc_ref[...] = jnp.zeros_like(acc_ref)

    if src_resident:
        start = pl.multiple_of(k * tile, tile)
        hw_blk = hw_ref[pl.ds(start, tile), :]
    else:
        hw_blk = hw_ref[...]
    acc_ref[...] += jnp.dot(a_ref[...], hw_blk, preferred_element_type=jnp.float32)

    @pl.when(k == pl.num_programs(1) - 1)
    def _():
        m = acc_ref[...]
        h_bf = hi_ref[...]                       # bf16 GRU state (dest row tile)
        # Fused gate GEMMs (bf16 x bf16, f32 acc): [tile,HP] x [HP,3HP], gates r|z|n.
        gi = jnp.dot(m.astype(jnp.bfloat16), wi_ref[...],
                     preferred_element_type=jnp.float32) + bi_ref[...]
        gh = jnp.dot(h_bf, wh_ref[...],
                     preferred_element_type=jnp.float32) + bh_ref[...]
        r = jax.nn.sigmoid(gi[:, :hp] + gh[:, :hp])
        z = jax.nn.sigmoid(gi[:, hp:2 * hp] + gh[:, hp:2 * hp])
        n = jnp.tanh(gi[:, 2 * hp:] + r * gh[:, 2 * hp:])
        h_new = (1.0 - z) * n + z * h_bf.astype(jnp.float32)
        if apply_relu:
            h_new = jnp.maximum(h_new, 0.0)
        out_ref[...] = h_new.astype(out_ref.dtype)


# ----------------------------------------------------------------------------
# pallas_call wrappers
# ----------------------------------------------------------------------------
_COMPILER_PARAMS = pltpu.CompilerParams(
    # rows parallel (megacore shard on v7x), reduction axis last / arbitrary.
    dimension_semantics=("parallel", "arbitrary"),
    # < 64 MiB physical on v7x (leaves headroom); well inside v5e/v6e 128 MiB.
    vmem_limit_bytes=48 * 1024 * 1024,
)


def _gcn_conv_call(a, x, w1, b1, tile, src_resident):
    np_, fp = x.shape
    hp = w1.shape[1]
    grid = (np_ // tile, np_ // tile)
    if src_resident:
        x_spec = pl.BlockSpec((np_, fp), lambda i, k: (0, 0))    # resident, loaded once
    else:
        x_spec = pl.BlockSpec((tile, fp), lambda i, k: (k, 0))   # streamed source tile
    return pl.pallas_call(
        functools.partial(gcn_conv_kernel, tile=tile, src_resident=src_resident),
        out_shape=jax.ShapeDtypeStruct((np_, hp), jnp.bfloat16),
        grid_spec=pltpu.PrefetchScalarGridSpec(
            num_scalar_prefetch=0,
            grid=grid,
            in_specs=[
                pl.BlockSpec((tile, tile), lambda i, k: (i, k)),  # A_gcn slab (bf16)
                x_spec,                                           # X (bf16)
                pl.BlockSpec((fp, hp), lambda i, k: (0, 0)),      # W1 (bf16, resident)
                pl.BlockSpec((1, hp), lambda i, k: (0, 0)),       # b1 (f32)
            ],
            out_specs=pl.BlockSpec((tile, hp), lambda i, k: (i, 0)),
            scratch_shapes=[pltpu.VMEM((tile, fp), jnp.float32)],
        ),
        compiler_params=_COMPILER_PARAMS,
    )(a, x, w1, b1)


def _gated_layer_call(a, hw, h, wi, wh, bi, bh, tile, apply_relu, src_resident):
    np_, hp = h.shape
    grid = (np_ // tile, np_ // tile)
    if src_resident:
        hw_spec = pl.BlockSpec((np_, hp), lambda i, k: (0, 0))    # resident, loaded once
    else:
        hw_spec = pl.BlockSpec((tile, hp), lambda i, k: (k, 0))   # streamed source tile
    return pl.pallas_call(
        functools.partial(gated_layer_kernel, tile=tile, hp=hp,
                          apply_relu=apply_relu, src_resident=src_resident),
        out_shape=jax.ShapeDtypeStruct((np_, hp), jnp.bfloat16),
        grid_spec=pltpu.PrefetchScalarGridSpec(
            num_scalar_prefetch=0,
            grid=grid,
            in_specs=[
                pl.BlockSpec((tile, tile), lambda i, k: (i, k)),  # A_msg slab (bf16)
                hw_spec,                                          # HW = h @ Wg[l] (bf16)
                pl.BlockSpec((tile, hp), lambda i, k: (i, 0)),    # GRU state dest tile (bf16)
                pl.BlockSpec((hp, 3 * hp), lambda i, k: (0, 0)),  # fused W_ih r|z|n (bf16)
                pl.BlockSpec((hp, 3 * hp), lambda i, k: (0, 0)),  # fused W_hh r|z|n (bf16)
                pl.BlockSpec((1, 3 * hp), lambda i, k: (0, 0)),   # fused b_ih (f32)
                pl.BlockSpec((1, 3 * hp), lambda i, k: (0, 0)),   # fused b_hh (f32)
            ],
            out_specs=pl.BlockSpec((tile, hp), lambda i, k: (i, 0)),
            scratch_shapes=[pltpu.VMEM((tile, hp), jnp.float32)],
        ),
        compiler_params=_COMPILER_PARAMS,
    )(a, hw, h, wi, wh, bi, bh)


# ----------------------------------------------------------------------------
# Glue: dense adjacency (edge scatter stays in plain JAX), padding, param fusion
# ----------------------------------------------------------------------------
def build_dense_adjacency(edge_index, num_nodes):
    src, dst = edge_index[0], edge_index[1]
    # GatedGraphConv propagation: add aggregation, no self loops, no norm.
    a_msg = jnp.zeros((num_nodes, num_nodes), jnp.float32).at[dst, src].add(1.0)
    # GCNConv gcn_norm (edge_weight=None): self loops + symmetric normalization.
    loops = jnp.arange(num_nodes, dtype=src.dtype)
    src_sl = jnp.concatenate([src, loops])
    dst_sl = jnp.concatenate([dst, loops])
    w = jnp.ones(src_sl.shape[0], jnp.float32)
    deg = jnp.zeros((num_nodes,), jnp.float32).at[dst_sl].add(w)
    dis = jnp.where(deg > 0, jax.lax.rsqrt(deg), 0.0)
    norm = dis[src_sl] * w * dis[dst_sl]
    a_gcn = jnp.zeros((num_nodes, num_nodes), jnp.float32).at[dst_sl, src_sl].add(norm)
    return a_gcn, a_msg


def _pad2(a, shape):
    return jnp.pad(a, [(0, s - d) for d, s in zip(a.shape, shape)])


def _fuse_gru(w, b, h, hp):
    """PyTorch GRUCell [3H,H]/[3H] -> lane-padded bf16 [HP,3HP] / f32 [1,3HP], gates r|z|n."""
    wp = jnp.zeros((hp, 3 * hp), jnp.float32)
    bp = jnp.zeros((1, 3 * hp), jnp.float32)
    for g in range(3):
        wp = wp.at[:h, g * hp:g * hp + h].set(w[g * h:(g + 1) * h, :].T)
        bp = bp.at[0, g * hp:g * hp + h].set(b[g * h:(g + 1) * h])
    return wp.astype(jnp.bfloat16), bp


def init_params(key, in_feat, hidden_dim, num_layers):
    ks = jax.random.split(key, 7)
    s = 0.1
    return dict(
        w1=jax.random.normal(ks[0], (hidden_dim, in_feat), jnp.float32) * s,
        b1=jax.random.normal(ks[1], (hidden_dim,), jnp.float32) * s,
        wg=jax.random.normal(ks[2], (num_layers, hidden_dim, hidden_dim), jnp.float32) * s,
        w_ih=jax.random.normal(ks[3], (3 * hidden_dim, hidden_dim), jnp.float32) * s,
        w_hh=jax.random.normal(ks[4], (3 * hidden_dim, hidden_dim), jnp.float32) * s,
        b_ih=jax.random.normal(ks[5], (3 * hidden_dim,), jnp.float32) * s,
        b_hh=jax.random.normal(ks[6], (3 * hidden_dim,), jnp.float32) * s,
    )


def gcn_forward(x, edge_index, params, num_layers):
    n, f = x.shape
    h_dim = params["w1"].shape[0]
    fp = _round_up(max(f, 128), 128)      # lane-dense feature dim
    hp = _round_up(max(h_dim, 128), 128)  # lane-dense hidden dim
    # Row/source tile: 512 for large graphs (~85% of HBM roofline per the
    # measured tile-size curve); small graphs use one lane/sublane-dense tile.
    tile = 512 if n >= 512 else _round_up(max(n, 128), 128)
    np_ = _round_up(n, tile)
    # Keep the streamed source operand (X / HW, bf16) fully VMEM-resident when
    # it fits; removes its per-row-tile re-stream entirely.
    src_resident = np_ * max(fp, hp) * 2 <= 4 * 1024 * 1024

    a_gcn, a_msg = build_dense_adjacency(edge_index, n)
    a_gcn = _pad2(a_gcn, (np_, np_)).astype(jnp.bfloat16)
    a_msg = _pad2(a_msg, (np_, np_)).astype(jnp.bfloat16)
    # TODO(synk): for large sparse graphs, store A_msg as int8 (v5e/v6e) or fp8
    # (v7x) with in-kernel upcast, and skip all-zero (tile,tile) slabs via
    # scalar-prefetched nonzero source-tile lists.
    xp = _pad2(x.astype(jnp.float32), (np_, fp)).astype(jnp.bfloat16)

    w1p = _pad2(params["w1"].T.astype(jnp.float32), (fp, hp)).astype(jnp.bfloat16)
    b1p = _pad2(params["b1"][None, :].astype(jnp.float32), (1, hp))
    wgp = (jnp.zeros((num_layers, hp, hp), jnp.float32)
           .at[:, :h_dim, :h_dim].set(params["wg"]).astype(jnp.bfloat16))
    wip, bip = _fuse_gru(params["w_ih"], params["b_ih"], h_dim, hp)
    whp, bhp = _fuse_gru(params["w_hh"], params["b_hh"], h_dim, hp)

    h = _gcn_conv_call(a_gcn, xp, w1p, b1p, tile, src_resident)   # bf16 [np_, hp]
    for l in range(num_layers):
        # Hoisted per-layer projection: HW = h @ Wg[l] (bf16 x bf16, f32 acc),
        # computed ONCE per layer instead of once per row tile inside the kernel.
        hw = jnp.dot(h, wgp[l], preferred_element_type=jnp.float32).astype(jnp.bfloat16)
        h = _gated_layer_call(a_msg, hw, h, wip, whp, bip, bhp, tile,
                              apply_relu=(l == num_layers - 1),
                              src_resident=src_resident)
    return h[:n, :h_dim].astype(jnp.float32)


# ----------------------------------------------------------------------------
# Pure-JAX f32 reference for correctness spot-check
# ----------------------------------------------------------------------------
def gcn_forward_ref(x, edge_index, params, num_layers):
    a_gcn, a_msg = build_dense_adjacency(edge_index, x.shape[0])
    H = params["w1"].shape[0]
    h = jnp.maximum(a_gcn @ (x @ params["w1"].T) + params["b1"], 0.0)
    for l in range(num_layers):
        m = a_msg @ (h @ params["wg"][l])
        gi = m @ params["w_ih"].T + params["b_ih"]
        gh = h @ params["w_hh"].T + params["b_hh"]
        r = jax.nn.sigmoid(gi[:, :H] + gh[:, :H])
        z = jax.nn.sigmoid(gi[:, H:2 * H] + gh[:, H:2 * H])
        nn_ = jnp.tanh(gi[:, 2 * H:] + r * gh[:, 2 * H:])
        h = (1.0 - z) * nn_ + z * h
    return jnp.maximum(h, 0.0)


if __name__ == "__main__":
    # args.in_feat = 8, args.hidden_dim = 32, args.out_dim = 3 (= GatedGraphConv layers)
    N, E = 16, 48
    IN_FEAT, HIDDEN_DIM, OUT_DIM = 8, 32, 3

    key = jax.random.PRNGKey(0)
    kx, ke, kp = jax.random.split(key, 3)
    x = jax.random.normal(kx, (N, IN_FEAT), jnp.float32)
    edge_index = jax.random.randint(ke, (2, E), 0, N, dtype=jnp.int32)
    params = init_params(kp, IN_FEAT, HIDDEN_DIM, OUT_DIM)

    out = gcn_forward(x, edge_index, params, num_layers=OUT_DIM)
    out = jax.block_until_ready(out)

    ref = gcn_forward_ref(x, edge_index, params, num_layers=OUT_DIM)
    assert out.shape == (N, HIDDEN_DIM)
    # bf16 adjacency / feature / weight operands and bf16 inter-layer state
    # (f32 accumulation) -> compare with loose tolerance.
    assert jnp.allclose(out, ref, rtol=3e-2, atol=3e-2), float(jnp.max(jnp.abs(out - ref)))

    print("KERNEL_OK")
</pallas_src>

<mosaic_0001>
module attributes {stable_mosaic.version = 11 : i64} {
  func.func @gcn_conv_kernel(%arg0: i32, %arg1: i32, %arg2: memref<128x128xbf16, #tpu.memory_space<vmem>>, %arg3: memref<128x128xbf16, #tpu.memory_space<vmem>>, %arg4: memref<128x128xbf16, #tpu.memory_space<vmem>>, %arg5: memref<1x128xf32, #tpu.memory_space<vmem>>, %arg6: memref<128x128xbf16, #tpu.memory_space<vmem>>, %arg7: memref<128x128xf32, #tpu.memory_space<vmem>>) attributes {dimension_semantics = [#tpu.dimension_semantics<parallel>, #tpu.dimension_semantics<arbitrary>], iteration_bounds = array<i64: 1, 1>, scalar_prefetch = 0 : i64, scratch_operands = 1 : i64, tpu.core_type = #tpu.core_type<tc>, window_params = [{transform_indices = @transform_0, window_bounds = array<i64: 128, 128>}, {pipeline_mode = #tpu.pipeline_mode<synchronous>, transform_indices = @transform_1, window_bounds = array<i64: 128, 128>}, {pipeline_mode = #tpu.pipeline_mode<synchronous>, transform_indices = @transform_2, window_bounds = array<i64: 128, 128>}, {pipeline_mode = #tpu.pipeline_mode<synchronous>, transform_indices = @transform_3, window_bounds = array<i64: 1, 128>}, {transform_indices = @transform_4, window_bounds = array<i64: 128, 128>}]} {
    %c0_i32 = arith.constant 0 : i32
    %0 = arith.cmpi eq, %arg1, %c0_i32 : i32
    %1 = arith.extui %0 : i1 to i32
    %c0_i32_0 = arith.constant 0 : i32
    %2 = arith.cmpi ne, %1, %c0_i32_0 : i32
    scf.if %2 {
      %cst_9 = arith.constant 0.000000e+00 : f32
      %15 = vector.broadcast %cst_9 : f32 to vector<128x128xf32>
      %c0_10 = arith.constant 0 : index
      %c0_11 = arith.constant 0 : index
      %16 = vector.load %arg7[%c0_10, %c0_11] : memref<128x128xf32, #tpu.memory_space<vmem>>, vector<128x128xf32>
      tpu.vector_store %arg7[%c0_10, %c0_11], %15 {strides = array<i32>} : memref<128x128xf32, #tpu.memory_space<vmem>>, vector<128x128xf32>,
    } else {
    }
    %c128_i32 = arith.constant 128 : i32
    %3 = arith.muli %arg1, %c128_i32 : i32
    %4 = tpu.assume_multiple %3, 128 : i32
    %5 = arith.index_cast %4 : i32 to index
    %c0 = arith.constant 0 : index
    %6 = vector.load %arg3[%5, %c0] : memref<128x128xbf16, #tpu.memory_space<vmem>>, vector<128x128xbf16>
    %c0_1 = arith.constant 0 : index
    %c0_2 = arith.constant 0 : index
    %7 = vector.load %arg7[%c0_1, %c0_2] : memref<128x128xf32, #tpu.memory_space<vmem>>, vector<128x128xf32>
    %c0_3 = arith.constant 0 : index
    %c0_4 = arith.constant 0 : index
    %8 = vector.load %arg2[%c0_3, %c0_4] : memref<128x128xbf16, #tpu.memory_space<vmem>>, vector<128x128xbf16>
    %cst = arith.constant dense<0.000000e+00> : vector<128x128xf32>
    %9 = tpu.matmul %8, %6, %cst {dimension_numbers = #tpu.dot_dimension_numbers<[1], [0], [0], [1], [0, 0, 1, 1], [], []>} : vector<128x128xbf16>, vector<128x128xbf16>, vector<128x128xf32> -> vector<128x128xf32>
    %10 = arith.addf %7, %9 : vector<128x128xf32>
    %c0_5 = arith.constant 0 : index
    %c0_6 = arith.constant 0 : index
    %11 = vector.load %arg7[%c0_5, %c0_6] : memref<128x128xf32, #tpu.memory_space<vmem>>, vector<128x128xf32>
    tpu.vector_store %arg7[%c0_5, %c0_6], %10 {strides = array<i32>} : memref<128x128xf32, #tpu.memory_space<vmem>>, vector<128x128xf32>,
    %c0_i32_7 = arith.constant 0 : i32
    %12 = arith.cmpi eq, %arg1, %c0_i32_7 : i32
    %13 = arith.extui %12 : i1 to i32
    %c0_i32_8 = arith.constant 0 : i32
    %14 = arith.cmpi ne, %13, %c0_i32_8 : i32
    scf.if %14 {
      %c0_9 = arith.constant 0 : index
      %c0_10 = arith.constant 0 : index
      %15 = vector.load %arg7[%c0_9, %c0_10] : memref<128x128xf32, #tpu.memory_space<vmem>>, vector<128x128xf32>
      %16 = arith.truncf %15 : vector<128x128xf32> to vector<128x128xbf16>
      %c0_11 = arith.constant 0 : index
      %c0_12 = arith.constant 0 : index
      %17 = vector.load %arg4[%c0_11, %c0_12] : memref<128x128xbf16, #tpu.memory_space<vmem>>, vector<128x128xbf16>
      %cst_13 = arith.constant dense<0.000000e+00> : vector<128x128xf32>
      %18 = tpu.matmul %16, %17, %cst_13 {dimension_numbers = #tpu.dot_dimension_numbers<[1], [0], [0], [1], [0, 0, 1, 1], [], []>} : vector<128x128xbf16>, vector<128x128xbf16>, vector<128x128xf32> -> vector<128x128xf32>
      %c0_14 = arith.constant 0 : index
      %c0_15 = arith.constant 0 : index
      %19 = vector.load %arg5[%c0_14, %c0_15] : memref<1x128xf32, #tpu.memory_space<vmem>>, vector<1x128xf32>
      %20 = vector.broadcast %19 : vector<1x128xf32> to vector<128x128xf32>
      %21 = arith.addf %18, %20 : vector<128x128xf32>
      %cst_16 = arith.constant 0.000000e+00 : f32
      %22 = vector.broadcast %cst_16 : f32 to vector<128x128xf32>
      %23 = arith.maximumf %21, %22 : vector<128x128xf32>
      %24 = arith.truncf %23 : vector<128x128xf32> to vector<128x128xbf16>
      %c0_17 = arith.constant 0 : index
      %c0_18 = arith.constant 0 : index
      %25 = vector.load %arg6[%c0_17, %c0_18] : memref<128x128xbf16, #tpu.memory_space<vmem>>, vector<128x128xbf16>
      tpu.vector_store %arg6[%c0_17, %c0_18], %24 {strides = array<i32>} : memref<128x128xbf16, #tpu.memory_space<vmem>>, vector<128x128xbf16>,
    } else {
    }
    return
  }
  func.func @transform_0(%arg0: i32, %arg1: i32) -> (i32, i32) {
    %c0_i32 = arith.constant 0 : i32
    return %arg0, %arg1 : i32, i32
  }
  func.func @transform_1(%arg0: i32, %arg1: i32) -> (i32, i32) {
    %c0_i32 = arith.constant 0 : i32
    %c0_i32_0 = arith.constant 0 : i32
    %c0_i32_1 = arith.constant 0 : i32
    return %c0_i32, %c0_i32_0 : i32, i32
  }
  func.func @transform_2(%arg0: i32, %arg1: i32) -> (i32, i32) {
    %c0_i32 = arith.constant 0 : i32
    %c0_i32_0 = arith.constant 0 : i32
    %c0_i32_1 = arith.constant 0 : i32
    return %c0_i32, %c0_i32_0 : i32, i32
  }
  func.func @transform_3(%arg0: i32, %arg1: i32) -> (i32, i32) {
    %c0_i32 = arith.constant 0 : i32
    %c0_i32_0 = arith.constant 0 : i32
    %c0_i32_1 = arith.constant 0 : i32
    return %c0_i32, %c0_i32_0 : i32, i32
  }
  func.func @transform_4(%arg0: i32, %arg1: i32) -> (i32, i32) {
    %c0_i32 = arith.constant 0 : i32
    %c0_i32_0 = arith.constant 0 : i32
    return %arg0, %c0_i32 : i32, i32
  }
}

</mosaic_0001>

<bundles_post_ra>
// kernel: tpu_custom_call.1
= control target key start
LH: loop header
LB: loop body
LE: loop exit
PB: predicated region body
PF: predicated region fallthrough
CT: control target
= control target key end

     0   :  { %9 = vsyncpa [#allocation4], 0  ;;  %s1094_s0 = inlined_call_operand.hbm [shape: bf16[128,128], index: 0, kind: input, shape index: {}]   ;;  %s1095_s1 = inlined_call_operand.hbm [shape: bf16[128,128], index: 1, kind: input, shape index: {}]   ;;  %s1096_s2 = inlined_call_operand.hbm [shape: bf16[128,128], index: 2, kind: input, shape index: {}]   ;;  %s1097_s3 = inlined_call_operand.vmem [shape: f32[1,128], index: 3, kind: input, shape index: {}]   ;;  %s1098_s4 = inlined_call_operand.hbm [shape: bf16[128,128], index: 4, kind: output, shape index: {}]  }
   0x1   :  { %10 = vsyncpa [#allocation7], 0 }
   0x2   :  { %11 = vsyncpa [#allocation5], 0  ;;  %s993_s15 = smov [#allocation6]   ;;  %s994_s17 = smov [#allocation3]  }
   0x3   :  { %s29_s16 = sshll.u32 %s993_s15, 4  ;;  %s17_s18 = sshll.u32 %s994_s17, 4  ;;  %s30_s16 = int_to_ptr.vmem [resolvable:$true] %s29_s16  ;;  %s1024_s18 = int_to_ptr.vmem [resolvable:$true] %s17_s18 }
   0x4   :  { %s899_s21 = scalar_lea.hbm %s1095_s1, 1024 }
   0x5   :  { %p900_p0 = scmp.ne.s32.totalorder %s1095_s1, %s899_s21  ;;  %p903_p1 = scmp.lt.u32.totalorder %s899_s21, %s1095_s1 }
   0x7   :  { %p905_p2 = pnand %p903_p1, %p900_p0 }
   0x9   :  { %908 = shalt.err (!%p905_p2)
}
   0xa   :  { %s909_s26 = scalar_lea.vmem %s30_s16, 1024  ;;  %p914_p4 = scmp.lt.s32.totalorder %s30_s16, %s30_s16 }
   0xb   :  { %p910_p3 = scmp.ne.s32.totalorder %s30_s16, %s909_s26  ;;  %p915_p5 = scmp.lt.s32.totalorder %s909_s26, %s909_s26 }
   0xd   :  { %p916_p6 = por %p915_p5, %p914_p4 }
   0xf   :  { %p917_p7 = pnand %p916_p6, %p910_p3 }
  0x11   :  { %920 = shalt.err (!%p917_p7)
}
  0x12   :  { %s995_s27 = smov 64   ;;  %s996_s28 = smov 4  }
  0x13   :  { %35 = dma.hbm_to_vmem [thread:$0]  %s1095_s1, 1024, %s30_s16, [#allocation7], %s995_s27, %s995_s27, %s996_s28  }
  0x14   :  { %s921_s7 = scalar_lea.hbm %s1094_s0, 1024 }
  0x15   :  { %p922_p8 = scmp.ne.s32.totalorder %s1094_s0, %s921_s7  ;;  %p925_p9 = scmp.lt.u32.totalorder %s921_s7, %s1094_s0 }
  0x17   :  { %p927_p10 = pnand %p925_p9, %p922_p8 }
  0x19   :  { %930 = shalt.err (!%p927_p10)
}
  0x1a   :  { %s931_s12 = scalar_lea.vmem %s1024_s18, 1024  ;;  %p936_p12 = scmp.lt.s32.totalorder %s1024_s18, %s1024_s18 }
  0x1b   :  { %p932_p11 = scmp.ne.s32.totalorder %s1024_s18, %s931_s12  ;;  %p937_p13 = scmp.lt.s32.totalorder %s931_s12, %s931_s12 }
  0x1d   :  { %p938_p0 = por %p937_p13, %p936_p12 }
  0x1f   :  { %p939_p1 = pnand %p938_p0, %p932_p11 }
  0x21   :  { %942 = shalt.err (!%p939_p1)
}
  0x22   :  { %23 = dma.hbm_to_vmem [thread:$0]  %s1094_s0, 1024, %s1024_s18, [#allocation4], %s995_s27, %s995_s27, %s996_s28  }
  0x23   :  { %s997_s14 = smov [#allocation8]   ;;  %s943_s19 = scalar_lea.hbm %s1096_s2, 1024 }
  0x24   :  { %s41_s15 = sshll.u32 %s997_s14, 4  ;;  %p944_p2 = scmp.ne.s32.totalorder %s1096_s2, %s943_s19  ;;  %s42_s15 = int_to_ptr.vmem [resolvable:$true] %s41_s15 }
  0x25   :  { %p947_p3 = scmp.lt.u32.totalorder %s943_s19, %s1096_s2 }
  0x27   :  { %p949_p4 = pnand %p947_p3, %p944_p2 }
  0x29   :  { %952 = shalt.err (!%p949_p4)
}
  0x2a   :  { %s953_s24 = scalar_lea.vmem %s42_s15, 1024  ;;  %p958_p6 = scmp.lt.s32.totalorder %s42_s15, %s42_s15 }
  0x2b   :  { %p954_p5 = scmp.ne.s32.totalorder %s42_s15, %s953_s24  ;;  %p959_p7 = scmp.lt.s32.totalorder %s953_s24, %s953_s24 }
  0x2d   :  { %p960_p8 = por %p959_p7, %p958_p6 }
  0x2f   :  { %p961_p9 = pnand %p960_p8, %p954_p5 }
  0x31   :  { %964 = shalt.err (!%p961_p9)
}
  0x32   :  { %47 = dma.hbm_to_vmem [thread:$0]  %s1096_s2, 1024, %s42_s15, [#allocation7], %s995_s27, %s995_s27, %s996_s28  }
  0x33   :  { %987 = dma.done.wait [#allocation4], 1024  }
  0x34   :  { %988 = vsyncadd [#allocation4], 4294966272 }
  0x35   :  { %989 = dma.done.wait [#allocation7], 2048  }
  0x36   :  { %990 = vsyncadd [#allocation7], 4294965248  ;;  %v875_v0 = vld [vmem:[#allocation6] sm:$0xff]   ;;  %v876_v1 = vld [vmem:[#allocation6 + $0x8] sm:$0xff]  }
  0x37   :  { %805 = vmatprep.subr.bf16.mxu0 %v875_v0  ;;  %v877_v2 = vld [vmem:[#allocation6 + $0x10] sm:$0xff]   ;;  %v878_v3 = vld [vmem:[#allocation6 + $0x18] sm:$0xff]   ;;  %v883_v4 = vld [vmem:[#allocation3] sm:$0xff]  }
  0x38   :  { %806 = vmatpush3.bf16.msra.mxu0 %v875_v0  ;;  %821 = vmatprep.mubr.bf16.mxu0 %v883_v4  ;;  %v879_v5 = vld [vmem:[#allocation6 + $0x20] sm:$0xff]   ;;  %v880_v6 = vld [vmem:[#allocation6 + $0x28] sm:$0xff]   ;;  %v881_v9 = vld [vmem:[#allocation6 + $0x30] sm:$0xff]  }
  0x39   :  { %807 = vmatprep.subr.bf16.mxu0 %v876_v1  ;;  %v891_v7 = vld [vmem:[#allocation8] sm:$0xff]   ;;  %v892_v8 = vld [vmem:[#allocation8 + $0x8] sm:$0xff]   ;;  %v893_v10 = vld [vmem:[#allocation8 + $0x10] sm:$0xff]  }
  0x3a   :  { %837 = vmatprep.subr.bf16.mxu1 %v891_v7  ;;  %v882_v11 = vld [vmem:[#allocation6 + $0x38] sm:$0xff]   ;;  %v895_v13 = vld [vmem:[#allocation8 + $0x20] sm:$0xff]   ;;  %v884_v14 = vld [vmem:[#allocation3 + $0x8] sm:$0xff]  }
  0x3b   :  { %838 = vmatpush3.bf16.msra.mxu1 %v891_v7  ;;  %v894_v12 = vld [vmem:[#allocation8 + $0x18] sm:$0xff]   ;;  %v885_v15 = vld [vmem:[#allocation3 + $0x10] sm:$0xff]   ;;  %v896_v16 = vld [vmem:[#allocation8 + $0x28] sm:$0xff]  }
  0x3c   :  { %808 = vmatpush3.bf16.msra.mxu0 %v876_v1  ;;  %839 = vmatprep.subr.bf16.mxu1 %v892_v8  ;;  %v897_v17 = vld [vmem:[#allocation8 + $0x30] sm:$0xff]   ;;  %v886_v18 = vld [vmem:[#allocation3 + $0x18] sm:$0xff]   ;;  %v887_v19 = vld [vmem:[#allocation3 + $0x20] sm:$0xff]  }
  0x3d   :  { %809 = vmatprep.subr.bf16.mxu0 %v877_v2  ;;  %v888_v20 = vld [vmem:[#allocation3 + $0x28] sm:$0xff]   ;;  %v889_v21 = vld [vmem:[#allocation3 + $0x30] sm:$0xff]   ;;  %v890_v22 = vld [vmem:[#allocation3 + $0x38] sm:$0xff]  }
  0x3e   :  { %v898_v23 = vld [vmem:[#allocation8 + $0x38] sm:$0xff]   ;;  %v685_v48 = vld [vmem:[%s1097_s3] ss:$0 sm:$0xff]  ;;  %s998_s3 = smov [#allocation9]  }
  0x3f   :  { %840 = vmatpush3.bf16.msra.mxu1 %v892_v8  ;;  %s654_s26 = sshll.u32 %s998_s3, 4  ;;  %s655_s26 = int_to_ptr.vmem [resolvable:$true] %s654_s26 }
  0x40   :  { %810 = vmatpush3.bf16.msra.mxu0 %v877_v2  ;;  %841 = vmatprep.subr.bf16.mxu1 %v893_v10  ;;  %s965_s29 = scalar_lea.vmem %s655_s26, 1024  ;;  %p970_p11 = scmp.lt.s32.totalorder %s655_s26, %s655_s26 }
  0x41   :  { %811 = vmatprep.subr.bf16.mxu0 %v878_v3  ;;  %p966_p10 = scmp.ne.s32.totalorder %s655_s26, %s965_s29  ;;  %p971_p12 = scmp.lt.s32.totalorder %s965_s29, %s965_s29 }
  0x43   :  { %842 = vmatpush3.bf16.msra.mxu1 %v893_v10  ;;  %p972_p13 = por %p971_p12, %p970_p11 }
  0x44   :  { %812 = vmatpush3.bf16.msra.mxu0 %v878_v3  ;;  %843 = vmatprep.subr.bf16.mxu1 %v894_v12 }
  0x45   :  { %813 = vmatprep.subr.bf16.mxu0 %v879_v5  ;;  %p973_p0 = pnand %p972_p13, %p966_p10 }
  0x47   :  { %844 = vmatpush3.bf16.msra.mxu1 %v894_v12 }
  0x48   :  { %814 = vmatpush3.bf16.msra.mxu0 %v879_v5  ;;  %845 = vmatprep.subr.bf16.mxu1 %v895_v13 }
  0x49   :  { %815 = vmatprep.subr.bf16.mxu0 %v880_v6 }
  0x4b   :  { %846 = vmatpush3.bf16.msra.mxu1 %v895_v13 }
  0x4c   :  { %816 = vmatpush3.bf16.msra.mxu0 %v880_v6  ;;  %847 = vmatprep.subr.bf16.mxu1 %v896_v16 }
  0x4d   :  { %817 = vmatprep.subr.bf16.mxu0 %v881_v9 }
  0x4f   :  { %848 = vmatpush3.bf16.msra.mxu1 %v896_v16 }
  0x50   :  { %818 = vmatpush3.bf16.msra.mxu0 %v881_v9  ;;  %849 = vmatprep.subr.bf16.mxu1 %v897_v17 }
  0x51   :  { %819 = vmatprep.subr.bf16.mxu0 %v882_v11 }
  0x53   :  { %850 = vmatpush3.bf16.msra.mxu1 %v897_v17 }
  0x54   :  { %820 = vmatpush3.bf16.msra.mxu0 %v882_v11  ;;  %851 = vmatprep.subr.bf16.mxu1 %v898_v23 }
  0x57   :  { %822 = vmatmul.mubr.bf16.vlgmr.msra.gmra.mrb[0].mxu0 %v884_v14  ;;  %852 = vmatpush3.bf16.msra.mxu1 %v898_v23 }
  0x58   :  { %825 = vmatprep.mubr.bf16.mxu0 %v885_v15 }
  0x5f   :  { %826 = vmatmul.mubr.bf16.gmra.mrb[4].mxu0 %v886_v18 }
  0x60   :  { %829 = vmatprep.mubr.bf16.mxu0 %v887_v19 }
  0x67   :  { %830 = vmatmul.mubr.bf16.gmra.mrb[8].mxu0 %v888_v20 }
  0x68   :  { %833 = vmatprep.mubr.bf16.mxu0 %v889_v21 }
  0x6f   :  { %834 = vmatmul.mubr.bf16.gmra.mrb[12].mxu0 %v890_v22 }
 0x12a   :  { %v823_v24 = vpop.f32.mrb[0].mxu0 }
 0x12b   :  { %v263_v25 = vpop.f32.mrb[1].mxu0 }
 0x12c   :  { %v824_v26 = vpop.f32.mrb[2].mxu0 }
 0x12d   :  { %v378_v27 = vpack.c.bf16 %v824_v26, %v823_v24  ;;  %v266_v28 = vpop.f32.mrb[3].mxu0 }
 0x12e   :  { %v377_v29 = vpack.c.bf16 %v266_v28, %v263_v25 }
 0x130   :  { %853 = vmatprep.mubr.bf16.mxu1 %v377_v29 }
 0x131   :  { %854 = vmatmul.mubr.bf16.vlgmr.msra.gmra.mrb[0].mxu1 %v378_v27 }
 0x132   :  { %v827_v30 = vpop.f32.mrb[4].mxu0 }
 0x133   :  { %v279_v31 = vpop.f32.mrb[5].mxu0 }
 0x134   :  { %v828_v32 = vpop.f32.mrb[6].mxu0 }
 0x135   :  { %v380_v33 = vpack.c.bf16 %v828_v32, %v827_v30  ;;  %v282_v34 = vpop.f32.mrb[7].mxu0 }
 0x136   :  { %v379_v35 = vpack.c.bf16 %v282_v34, %v279_v31 }
 0x138   :  { %857 = vmatprep.mubr.bf16.mxu1 %v379_v35 }
 0x139   :  { %858 = vmatmul.mubr.bf16.gmra.mrb[4].mxu1 %v380_v33 }
 0x13a   :  { %v831_v36 = vpop.f32.mrb[8].mxu0 }
 0x13b   :  { %v295_v37 = vpop.f32.mrb[9].mxu0 }
 0x13c   :  { %v832_v38 = vpop.f32.mrb[10].mxu0 }
 0x13d   :  { %v382_v39 = vpack.c.bf16 %v832_v38, %v831_v36  ;;  %v298_v40 = vpop.f32.mrb[11].mxu0 }
 0x13e   :  { %v381_v41 = vpack.c.bf16 %v298_v40, %v295_v37 }
 0x140   :  { %861 = vmatprep.mubr.bf16.mxu1 %v381_v41 }
 0x141   :  { %862 = vmatmul.mubr.bf16.gmra.mrb[8].mxu1 %v382_v39 }
 0x142   :  { %v835_v42 = vpop.f32.mrb[12].mxu0 }
 0x143   :  { %v311_v43 = vpop.f32.mrb[13].mxu0 }
 0x144   :  { %v836_v44 = vpop.f32.mrb[14].mxu0 }
 0x145   :  { %v384_v45 = vpack.c.bf16 %v836_v44, %v835_v42  ;;  %v314_v46 = vpop.f32.mrb[15].mxu0 }
 0x146   :  { %v383_v47 = vpack.c.bf16 %v314_v46, %v311_v43 }
 0x148   :  { %865 = vmatprep.mubr.bf16.mxu1 %v383_v47 }
 0x149   :  { %866 = vmatmul.mubr.bf16.gmra.mrb[12].mxu1 %v384_v45 }
 0x204   :  { %v855_v49 = vpop.f32.mrb[0].mxu1 }
 0x205   :  { %v499_v50 = vadd.f32 %v855_v49, %v685_v48  ;;  %v490_v51 = vpop.f32.mrb[1].mxu1 }
 0x206   :  { %v491_v52 = vadd.f32 %v685_v48, %v490_v51  ;;  %v856_v53 = vpop.f32.mrb[2].mxu1 }
 0x207   :  { %v502_v54 = vadd.f32 %v856_v53, %v685_v48  ;;  %v493_v55 = vpop.f32.mrb[3].mxu1  ;;  %v555_v57 = vmax.f32 %v499_v50, 0.0 }
 0x208   :  { %v494_v56 = vadd.f32 %v685_v48, %v493_v55  ;;  %v553_v59 = vmax.f32 %v491_v52, 0.0 }
 0x209   :  { %v556_v58 = vmax.f32 %v502_v54, 0.0 }
 0x20a   :  { %v554_v60 = vmax.f32 %v494_v56, 0.0 }
 0x20b   :  { %v734_v61 = vpack.c.bf16 %v556_v58, %v555_v57 }
 0x20c   :  { %v729_v62 = vpack.c.bf16 %v554_v60, %v553_v59  ;;  %v859_v63 = vpop.f32.mrb[4].mxu1 }
 0x20d   :  { %766 = vst [vmem:[#allocation9 + $0x8] sm:$0xff] %v734_v61   ;;  %v515_v0 = vadd.f32 %v859_v63, %v685_v48  ;;  %v506_v1 = vpop.f32.mrb[5].mxu1 }
 0x20e   :  { %730 = vst [vmem:[#allocation9] sm:$0xff] %v729_v62   ;;  %v507_v2 = vadd.f32 %v685_v48, %v506_v1  ;;  %v860_v3 = vpop.f32.mrb[6].mxu1 }
 0x20f   :  { %v518_v4 = vadd.f32 %v860_v3, %v685_v48  ;;  %v509_v5 = vpop.f32.mrb[7].mxu1  ;;  %v559_v7 = vmax.f32 %v515_v0, 0.0 }
 0x210   :  { %v510_v6 = vadd.f32 %v685_v48, %v509_v5  ;;  %v557_v9 = vmax.f32 %v507_v2, 0.0 }
 0x211   :  { %v560_v8 = vmax.f32 %v518_v4, 0.0 }
 0x212   :  { %v558_v10 = vmax.f32 %v510_v6, 0.0 }
 0x213   :  { %v744_v11 = vpack.c.bf16 %v560_v8, %v559_v7 }
 0x214   :  { %v739_v12 = vpack.c.bf16 %v558_v10, %v557_v9  ;;  %v863_v13 = vpop.f32.mrb[8].mxu1 }
 0x215   :  { %768 = vst [vmem:[#allocation9 + $0x18] sm:$0xff] %v744_v11   ;;  %v531_v14 = vadd.f32 %v863_v13, %v685_v48  ;;  %v522_v15 = vpop.f32.mrb[9].mxu1 }
 0x216   :  { %767 = vst [vmem:[#allocation9 + $0x10] sm:$0xff] %v739_v12   ;;  %v523_v16 = vadd.f32 %v685_v48, %v522_v15  ;;  %v864_v17 = vpop.f32.mrb[10].mxu1 }
 0x217   :  { %v534_v18 = vadd.f32 %v864_v17, %v685_v48  ;;  %v525_v19 = vpop.f32.mrb[11].mxu1  ;;  %v563_v21 = vmax.f32 %v531_v14, 0.0 }
 0x218   :  { %v526_v20 = vadd.f32 %v685_v48, %v525_v19  ;;  %v561_v23 = vmax.f32 %v523_v16, 0.0 }
 0x219   :  { %v564_v22 = vmax.f32 %v534_v18, 0.0 }
 0x21a   :  { %v562_v24 = vmax.f32 %v526_v20, 0.0 }
 0x21b   :  { %v754_v25 = vpack.c.bf16 %v564_v22, %v563_v21 }
 0x21c   :  { %v749_v26 = vpack.c.bf16 %v562_v24, %v561_v23  ;;  %v867_v27 = vpop.f32.mrb[12].mxu1 }
 0x21d   :  { %770 = vst [vmem:[#allocation9 + $0x28] sm:$0xff] %v754_v25   ;;  %v547_v28 = vadd.f32 %v867_v27, %v685_v48  ;;  %v538_v29 = vpop.f32.mrb[13].mxu1 }
 0x21e   :  { %769 = vst [vmem:[#allocation9 + $0x20] sm:$0xff] %v749_v26   ;;  %v539_v30 = vadd.f32 %v685_v48, %v538_v29  ;;  %v868_v31 = vpop.f32.mrb[14].mxu1 }
 0x21f   :  { %v550_v32 = vadd.f32 %v868_v31, %v685_v48  ;;  %v541_v33 = vpop.f32.mrb[15].mxu1  ;;  %v567_v35 = vmax.f32 %v547_v28, 0.0 }
 0x220   :  { %v542_v34 = vadd.f32 %v685_v48, %v541_v33  ;;  %v565_v37 = vmax.f32 %v539_v30, 0.0 }
 0x221   :  { %v568_v36 = vmax.f32 %v550_v32, 0.0 }
 0x222   :  { %v566_v38 = vmax.f32 %v542_v34, 0.0 }
 0x223   :  { %v764_v39 = vpack.c.bf16 %v568_v36, %v567_v35 }
 0x224   :  { %v759_v40 = vpack.c.bf16 %v566_v38, %v565_v37 }
 0x225   :  { %772 = vst [vmem:[#allocation9 + $0x38] sm:$0xff] %v764_v39  }
 0x226   :  { %771 = vst [vmem:[#allocation9 + $0x30] sm:$0xff] %v759_v40  }
 0x227   :  { %976 = shalt.err (!%p973_p0)
}
 0x228   :  { %s977_s6 = scalar_lea.hbm %s1098_s4, 1024 }
 0x229   :  { %p978_p1 = scmp.ne.s32.totalorder %s1098_s4, %s977_s6  ;;  %p981_p2 = scmp.lt.u32.totalorder %s977_s6, %s1098_s4 }
 0x22b   :  { %p983_p3 = pnand %p981_p2, %p978_p1 }
 0x22d   :  { %986 = shalt.err (!%p983_p3)
}
 0x22e   :  { %660 = dma.vmem_to_hbm [thread:$0]  %s655_s26, 1024, %s1098_s4, [#allocation5], %s995_s27, %s995_s27, %s996_s28  }
 0x22f   :  { %991 = dma.done.wait [#allocation5], 1024  }
 0x230   :  { %992 = vsyncadd [#allocation5], 4294966272 }
 0x231   :  { %664 = vsyncpa [#allocation4], 1 }
 0x232   :  { %665 = vsyncpa [#allocation7], 1 }
 0x233   :  { %666 = vsyncpa [#allocation5], 1 }

</bundles_post_ra>
